<compile_context>
chip_gen: v6e
topology: v6e:2x2x1
jax: 0.10.0
libtpu: 0.0.40
codegen_flags: <defaults>
</compile_context>

<pallas_src>
import functools

import jax
import jax.numpy as jnp
from jax.experimental import pallas as pl
from jax.experimental.pallas import tpu as pltpu

_LANES = 128


# --------------------------------------------------------------------------- #
# Tiling helpers
# --------------------------------------------------------------------------- #
def _sublane_multiple(dtype) -> int:
    """Row alignment required by sublane packing: f32->8, bf16->16, int8->32."""
    itemsize = jnp.dtype(dtype).itemsize
    return max(8, 8 * (4 // max(1, itemsize)))


def _vmem_capacity() -> int:
    try:
        return int(pltpu.get_tpu_info().vmem_capacity_bytes)
    except Exception:  # pragma: no cover - conservative fallback
        return 64 * 1024 * 1024  # v7x per-TensorCore VMEM (smallest generation)


def _pick_tile_rows(R: int, bytes_per_row: int, align: int, cap_rows: int = 2048) -> int:
    """Largest aligned tile height that keeps double-buffered planes in budget."""
    if R <= align:
        return R  # single block == full (tiny) row extent; exempt from x8 rule
    budget = int(0.30 * _vmem_capacity())        # ample headroom for everything else
    rows = budget // max(1, 2 * bytes_per_row)   # x2: double-buffered pipeline
    rows = max(align, (rows // align) * align)
    rows = min(rows, cap_rows, (R // align) * align)
    return int(rows)


def _vmem_limit(step_bytes: int) -> int:
    cap = _vmem_capacity()
    return int(min(int(0.75 * cap), max(32 * 1024 * 1024, 4 * step_bytes)))


# --------------------------------------------------------------------------- #
# Pass 1: per-tile partial min/max of diff (vreg-shaped, pure VALU)
# --------------------------------------------------------------------------- #
def _reduce_kernel(x_ref, pmin_ref, pmax_ref, *, n_valid, tile_rows):
    t = pl.program_id(1)

    r = x_ref[0].astype(jnp.float32)
    g = x_ref[1].astype(jnp.float32)
    b = x_ref[2].astype(jnp.float32)
    ev = x_ref[3].astype(jnp.float32)

    gs = 0.2989 * r + 0.587 * g + 0.114 * b            # torchvision Grayscale
    diff = jnp.maximum(gs - ev, 0.0)

    # Mask rows past the true extent (ceil-div boundary block reads undefined
    # data) and lane padding past H*W (wrapper zero-pads when H*W % 128 != 0).
    row = jax.lax.broadcasted_iota(jnp.int32, diff.shape, 0)
    lane = jax.lax.broadcasted_iota(jnp.int32, diff.shape, 1)
    flat = (t * tile_rows + row) * _LANES + lane
    valid = flat < n_valid
    dmin = jnp.where(valid, diff, jnp.inf)
    dmax = jnp.where(valid, diff, -jnp.inf)

    if tile_rows % 8 == 0:
        # Sublane-group fold: (T, 128) -> (T/8, 8, 128), reduce the leading
        # (untiled) axis -> pure elementwise VALU mins/maxes of vreg tiles.
        pmin_ref[...] = jnp.min(dmin.reshape(tile_rows // 8, 8, _LANES), axis=0)
        pmax_ref[...] = jnp.max(dmax.reshape(tile_rows // 8, 8, _LANES), axis=0)
    else:
        # Tiny-image fallback (row extent smaller than a sublane group).
        pmin_ref[...] = jnp.broadcast_to(jnp.min(dmin), (8, _LANES)).astype(jnp.float32)
        pmax_ref[...] = jnp.broadcast_to(jnp.max(dmax), (8, _LANES)).astype(jnp.float32)


# --------------------------------------------------------------------------- #
# Pass 2: normalize with the per-image scalars and write the 5-channel output
# --------------------------------------------------------------------------- #
def _map_kernel(stats_ref, x_ref, m_ref, o_ref, *, blending_factor):
    bidx = pl.program_id(0)
    dmin = stats_ref[bidx, 0]          # per-image min(diff)     (SMEM scalar)
    inv_rng = stats_ref[bidx, 1]       # 1 / (max - min + 1e-6)  (SMEM scalar)

    r = x_ref[0].astype(jnp.float32)
    g = x_ref[1].astype(jnp.float32)
    b = x_ref[2].astype(jnp.float32)
    ev = x_ref[3].astype(jnp.float32)

    gs = 0.2989 * r + 0.587 * g + 0.114 * b
    diff = jnp.maximum(gs - ev, 0.0)
    diff_n = (diff - dmin) * inv_rng

    mask = m_ref[0].astype(jnp.float32)
    adj = jnp.clip(mask + blending_factor * diff_n, 0.0, 1.0)
    inv_adj = 1.0 - adj

    o_ref[0] = (r * inv_adj).astype(o_ref.dtype)
    o_ref[1] = (g * inv_adj).astype(o_ref.dtype)
    o_ref[2] = (b * inv_adj).astype(o_ref.dtype)
    o_ref[3] = x_ref[3]                # event channel exact pass-through
    o_ref[4] = adj.astype(o_ref.dtype)


# --------------------------------------------------------------------------- #
# Wrapper
# --------------------------------------------------------------------------- #
def event_masked_removal_combiner(x, artifact_map, *, blending_factor=0.5,
                                  tile_rows=None):
    """x: (B, 4, H, W), artifact_map: (B, 1, H, W) -> (B, 5, H, W)."""
    B, C, H, W = x.shape
    assert C == 4, "expected 4 input channels (colour + event reconstruction)"
    assert artifact_map.shape == (B, 1, H, W)

    x_item = jnp.dtype(x.dtype).itemsize
    m_item = jnp.dtype(artifact_map.dtype).itemsize
    align = max(_sublane_multiple(x.dtype), _sublane_multiple(artifact_map.dtype))

    # Lane-dense spatial layout: flatten (H, W) -> (R, 128); pad flat dim to a
    # multiple of 128 only when necessary (pad/slice cost only on odd shapes).
    N = H * W
    R = pl.cdiv(N, _LANES)
    pad = R * _LANES - N
    xf = x.reshape(B, 4, N)
    mf = artifact_map.reshape(B, 1, N)
    if pad:
        # TODO(synk): this pad (and the matching output slice) adds an extra
        # XLA copy for H*W % 128 != 0; aligned resolutions take the zero-copy path.
        xf = jnp.pad(xf, ((0, 0), (0, 0), (0, pad)))
        mf = jnp.pad(mf, ((0, 0), (0, 0), (0, pad)))
    x4 = xf.reshape(B, 4, R, _LANES)
    m4 = mf.reshape(B, 1, R, _LANES)

    # Per-pass tile heights (reduce pass streams only 4 planes -> larger tiles).
    red_bytes_per_row = 4 * _LANES * x_item
    map_bytes_per_row = (9 * x_item + m_item) * _LANES
    if tile_rows is None:
        tr_red = _pick_tile_rows(R, red_bytes_per_row, align)
        tr_map = _pick_tile_rows(R, map_bytes_per_row, align)
    else:
        tr = int(min(tile_rows, R))
        assert tr >= 1 and (tr % align == 0 or tr == R), \
            f"tile_rows must be a multiple of {align} (or the full row extent)"
        tr_red = tr_map = tr
    T_red = pl.cdiv(R, tr_red)
    T_map = pl.cdiv(R, tr_map)

    # ----- Pass 1: per-(image, tile) partial min / max ---------------------
    reduce_kernel = functools.partial(_reduce_kernel, n_valid=N, tile_rows=tr_red)
    pmin, pmax = pl.pallas_call(
        reduce_kernel,
        out_shape=(jax.ShapeDtypeStruct((B, T_red, 8, _LANES), jnp.float32),
                   jax.ShapeDtypeStruct((B, T_red, 8, _LANES), jnp.float32)),
        grid=(B, T_red),
        in_specs=[
            pl.BlockSpec((None, 4, tr_red, _LANES), lambda b, t: (b, 0, t, 0)),
        ],
        out_specs=(
            pl.BlockSpec((None, None, 8, _LANES), lambda b, t: (b, t, 0, 0)),
            pl.BlockSpec((None, None, 8, _LANES), lambda b, t: (b, t, 0, 0)),
        ),
        compiler_params=pltpu.CompilerParams(
            # No carried state anywhere -> both axes are truly parallel (this
            # is what lets v7x use both TensorCores even for B == 1).
            dimension_semantics=("parallel", "parallel"),
            vmem_limit_bytes=_vmem_limit(2 * tr_red * red_bytes_per_row),
        ),
    )(x4)

    # Tiny wrapper-side finalization of the per-image statistics.
    dmin = jnp.min(pmin, axis=(1, 2, 3))                      # (B,)
    dmax = jnp.max(pmax, axis=(1, 2, 3))                      # (B,)
    inv_rng = 1.0 / (dmax - dmin + 1e-6)
    stats = jnp.stack([dmin, inv_rng], axis=1).astype(jnp.float32)  # (B, 2)

    # ----- Pass 2: map + write the 5-channel output ------------------------
    map_kernel = functools.partial(_map_kernel, blending_factor=blending_factor)
    out4 = pl.pallas_call(
        map_kernel,
        out_shape=jax.ShapeDtypeStruct((B, 5, R, _LANES), x.dtype),
        grid=(B, T_map),
        in_specs=[
            # Per-image (min, 1/range) scalars live whole in SMEM.
            pl.BlockSpec(memory_space=pltpu.MemorySpace.SMEM),
            pl.BlockSpec((None, 4, tr_map, _LANES), lambda b, t: (b, 0, t, 0)),
            pl.BlockSpec((None, 1, tr_map, _LANES), lambda b, t: (b, 0, t, 0)),
        ],
        out_specs=pl.BlockSpec((None, 5, tr_map, _LANES), lambda b, t: (b, 0, t, 0)),
        compiler_params=pltpu.CompilerParams(
            dimension_semantics=("parallel", "parallel"),
            vmem_limit_bytes=_vmem_limit(2 * tr_map * map_bytes_per_row),
        ),
    )(stats, x4, m4)

    out = out4.reshape(B, 5, R * _LANES)
    if pad:
        out = out[:, :, :N]
    return out.reshape(B, 5, H, W)


# --------------------------------------------------------------------------- #
# Pure-JAX reference
# --------------------------------------------------------------------------- #
def _reference(x, artifact_map, blending_factor=0.5):
    x = x.astype(jnp.float32)
    artifact_map = artifact_map.astype(jnp.float32)
    bgr = x[:, :3]
    ev = x[:, 3:4]
    gs = 0.2989 * x[:, 0:1] + 0.587 * x[:, 1:2] + 0.114 * x[:, 2:3]
    diff = jnp.maximum(gs - ev, 0.0)
    dmin = jnp.min(diff, axis=(2, 3), keepdims=True)
    dmax = jnp.max(diff, axis=(2, 3), keepdims=True)
    diff = (diff - dmin) / (dmax - dmin + 1e-6)
    adj = jnp.clip(artifact_map + blending_factor * diff, 0.0, 1.0)
    return jnp.concatenate([bgr * (1.0 - adj), ev, adj], axis=1)


if __name__ == "__main__":
    key = jax.random.PRNGKey(0)
    k1, k2, k3, k4, k5, k6, k7, k8 = jax.random.split(key, 8)

    # Case 1: tiny image (R = 2 flattened rows) -> single-block tiny path.
    x1 = jax.random.uniform(k1, (2, 4, 16, 16), dtype=jnp.float32)
    m1 = jax.random.uniform(k2, (2, 1, 16, 16), dtype=jnp.float32)
    out1 = jax.block_until_ready(event_masked_removal_combiner(x1, m1))
    assert out1.shape == (2, 5, 16, 16)
    assert jnp.allclose(out1, _reference(x1, m1), atol=1e-5, rtol=1e-5), "mismatch (1)"

    # Case 2: R = 17 rows -> ceil-div multi-tile with a row-OOB boundary block.
    x2 = jax.random.uniform(k3, (2, 4, 16, 136), dtype=jnp.float32)
    m2 = jax.random.uniform(k4, (2, 1, 16, 136), dtype=jnp.float32)
    out2 = jax.block_until_ready(event_masked_removal_combiner(x2, m2))
    assert out2.shape == (2, 5, 16, 136)
    assert jnp.allclose(out2, _reference(x2, m2), atol=1e-5, rtol=1e-5), "mismatch (2)"

    # Case 3: H*W % 128 != 0 (lane padding) with strictly positive diff so a
    # wrongly-included padded zero would corrupt the per-image min.
    x3c = 0.5 + 0.5 * jax.random.uniform(k5, (2, 3, 12, 20), dtype=jnp.float32)
    x3e = 0.2 * jax.random.uniform(k6, (2, 1, 12, 20), dtype=jnp.float32)
    x3 = jnp.concatenate([x3c, x3e], axis=1)
    m3 = jax.random.uniform(k7, (2, 1, 12, 20), dtype=jnp.float32)
    out3 = jax.block_until_ready(event_masked_removal_combiner(x3, m3))
    assert out3.shape == (2, 5, 12, 20)
    assert jnp.allclose(out3, _reference(x3, m3), atol=1e-5, rtol=1e-5), "mismatch (3)"

    # Case 4: bf16 image with f32 mask (mixed dtypes, no wrapper cast), B = 1.
    x4_ = jax.random.uniform(k8, (1, 4, 32, 512), dtype=jnp.float32)
    m4_ = jax.random.uniform(k2, (1, 1, 32, 512), dtype=jnp.float32)
    out4 = jax.block_until_ready(
        event_masked_removal_combiner(x4_.astype(jnp.bfloat16), m4_))
    ref4 = _reference(x4_.astype(jnp.bfloat16), m4_)
    assert out4.shape == (1, 5, 32, 512)
    assert jnp.allclose(out4.astype(jnp.float32), ref4, atol=2e-2, rtol=2e-2), "mismatch (4)"

    print("KERNEL_OK")
</pallas_src>

<mosaic_0001>
module attributes {stable_mosaic.version = 11 : i64} {
  func.func @_reduce_kernel(%arg0: i32, %arg1: i32, %arg2: memref<1x4x2x128xf32, #tpu.memory_space<vmem>>, %arg3: memref<1x1x8x128xf32, #tpu.memory_space<vmem>>, %arg4: memref<1x1x8x128xf32, #tpu.memory_space<vmem>>) attributes {dimension_semantics = [#tpu.dimension_semantics<parallel>, #tpu.dimension_semantics<parallel>], iteration_bounds = array<i64: 2, 1>, scalar_prefetch = 0 : i64, scratch_operands = 0 : i64, tpu.core_type = #tpu.core_type<tc>, window_params = [{transform_indices = @transform_0, window_bounds = array<i64: 1, 4, 2, 128>}, {transform_indices = @transform_1, window_bounds = array<i64: 1, 1, 8, 128>}, {transform_indices = @transform_2, window_bounds = array<i64: 1, 1, 8, 128>}]} {
    %c0 = arith.constant 0 : index
    %c0_0 = arith.constant 0 : index
    %c0_1 = arith.constant 0 : index
    %c0_2 = arith.constant 0 : index
    %0 = vector.load %arg2[%c0, %c0_0, %c0_1, %c0_2] : memref<1x4x2x128xf32, #tpu.memory_space<vmem>>, vector<1x1x2x128xf32>
    %1 = vector.shape_cast %0 : vector<1x1x2x128xf32> to vector<2x128xf32>
    %c0_3 = arith.constant 0 : index
    %c1 = arith.constant 1 : index
    %c0_4 = arith.constant 0 : index
    %c0_5 = arith.constant 0 : index
    %2 = vector.load %arg2[%c0_3, %c1, %c0_4, %c0_5] : memref<1x4x2x128xf32, #tpu.memory_space<vmem>>, vector<1x1x2x128xf32>
    %3 = vector.shape_cast %2 : vector<1x1x2x128xf32> to vector<2x128xf32>
    %c0_6 = arith.constant 0 : index
    %c2 = arith.constant 2 : index
    %c0_7 = arith.constant 0 : index
    %c0_8 = arith.constant 0 : index
    %4 = vector.load %arg2[%c0_6, %c2, %c0_7, %c0_8] : memref<1x4x2x128xf32, #tpu.memory_space<vmem>>, vector<1x1x2x128xf32>
    %5 = vector.shape_cast %4 : vector<1x1x2x128xf32> to vector<2x128xf32>
    %c0_9 = arith.constant 0 : index
    %c3 = arith.constant 3 : index
    %c0_10 = arith.constant 0 : index
    %c0_11 = arith.constant 0 : index
    %6 = vector.load %arg2[%c0_9, %c3, %c0_10, %c0_11] : memref<1x4x2x128xf32, #tpu.memory_space<vmem>>, vector<1x1x2x128xf32>
    %7 = vector.shape_cast %6 : vector<1x1x2x128xf32> to vector<2x128xf32>
    %cst = arith.constant 2.989000e-01 : f32
    %8 = vector.broadcast %cst : f32 to vector<2x128xf32>
    %9 = arith.mulf %8, %1 : vector<2x128xf32>
    %cst_12 = arith.constant 5.870000e-01 : f32
    %10 = vector.broadcast %cst_12 : f32 to vector<2x128xf32>
    %11 = arith.mulf %10, %3 : vector<2x128xf32>
    %12 = arith.addf %9, %11 : vector<2x128xf32>
    %cst_13 = arith.constant 1.140000e-01 : f32
    %13 = vector.broadcast %cst_13 : f32 to vector<2x128xf32>
    %14 = arith.mulf %13, %5 : vector<2x128xf32>
    %15 = arith.addf %12, %14 : vector<2x128xf32>
    %16 = arith.subf %15, %7 : vector<2x128xf32>
    %cst_14 = arith.constant 0.000000e+00 : f32
    %17 = vector.broadcast %cst_14 : f32 to vector<2x128xf32>
    %18 = arith.maximumf %16, %17 : vector<2x128xf32>
    %19 = tpu.iota {dimensions = array<i32: 0>} : vector<2x128xi32>
    %20 = tpu.iota {dimensions = array<i32: 1>} : vector<2x128xi32>
    %c2_i32 = arith.constant 2 : i32
    %21 = arith.muli %arg1, %c2_i32 : i32
    %22 = vector.broadcast %21 : i32 to vector<2x128xi32>
    %23 = arith.addi %22, %19 : vector<2x128xi32>
    %c128_i32 = arith.constant 128 : i32
    %24 = vector.broadcast %c128_i32 : i32 to vector<2x128xi32>
    %25 = arith.muli %23, %24 : vector<2x128xi32>
    %26 = arith.addi %25, %20 : vector<2x128xi32>
    %c256_i32 = arith.constant 256 : i32
    %27 = vector.broadcast %c256_i32 : i32 to vector<2x128xi32>
    %28 = arith.cmpi slt, %26, %27 : vector<2x128xi32>
    %cst_15 = arith.constant 0x7F800000 : f32
    %29 = vector.broadcast %cst_15 : f32 to vector<2x128xf32>
    %30 = arith.select %28, %18, %29 : vector<2x128xi1>, vector<2x128xf32>
    %cst_16 = arith.constant 0xFF800000 : f32
    %31 = vector.broadcast %cst_16 : f32 to vector<2x128xf32>
    %32 = arith.select %28, %18, %31 : vector<2x128xi1>, vector<2x128xf32>
    %33 = vector.shape_cast %30 : vector<2x128xf32> to vector<1x2x128xf32>
    %cst_17 = arith.constant dense<0x7F800000> : vector<1xf32>
    %34 = vector.multi_reduction <minimumf>, %33, %cst_17 [1, 2] : vector<1x2x128xf32> to vector<1xf32>
    %35 = vector.shape_cast %34 : vector<1xf32> to vector<1x1x1xf32>
    %36 = vector.extract %35[0, 0, 0] : f32 from vector<1x1x1xf32>
    %37 = vector.broadcast %36 : f32 to vector<8x128xf32>
    %c0_18 = arith.constant 0 : index
    %c0_19 = arith.constant 0 : index
    %c0_20 = arith.constant 0 : index
    %c0_21 = arith.constant 0 : index
    %38 = vector.load %arg3[%c0_18, %c0_19, %c0_20, %c0_21] : memref<1x1x8x128xf32, #tpu.memory_space<vmem>>, vector<1x1x8x128xf32>
    %39 = vector.shape_cast %38 : vector<1x1x8x128xf32> to vector<8x128xf32>
    %40 = vector.shape_cast %37 : vector<8x128xf32> to vector<1x1x8x128xf32>
    tpu.vector_store %arg3[%c0_18, %c0_19, %c0_20, %c0_21], %40 {strides = array<i32>} : memref<1x1x8x128xf32, #tpu.memory_space<vmem>>, vector<1x1x8x128xf32>,
    %41 = vector.shape_cast %32 : vector<2x128xf32> to vector<1x2x128xf32>
    %cst_22 = arith.constant dense<0xFF800000> : vector<1xf32>
    %42 = vector.multi_reduction <maximumf>, %41, %cst_22 [1, 2] : vector<1x2x128xf32> to vector<1xf32>
    %43 = vector.shape_cast %42 : vector<1xf32> to vector<1x1x1xf32>
    %44 = vector.extract %43[0, 0, 0] : f32 from vector<1x1x1xf32>
    %45 = vector.broadcast %44 : f32 to vector<8x128xf32>
    %c0_23 = arith.constant 0 : index
    %c0_24 = arith.constant 0 : index
    %c0_25 = arith.constant 0 : index
    %c0_26 = arith.constant 0 : index
    %46 = vector.load %arg4[%c0_23, %c0_24, %c0_25, %c0_26] : memref<1x1x8x128xf32, #tpu.memory_space<vmem>>, vector<1x1x8x128xf32>
    %47 = vector.shape_cast %46 : vector<1x1x8x128xf32> to vector<8x128xf32>
    %48 = vector.shape_cast %45 : vector<8x128xf32> to vector<1x1x8x128xf32>
    tpu.vector_store %arg4[%c0_23, %c0_24, %c0_25, %c0_26], %48 {strides = array<i32>} : memref<1x1x8x128xf32, #tpu.memory_space<vmem>>, vector<1x1x8x128xf32>,
    return
  }
  func.func @transform_0(%arg0: i32, %arg1: i32) -> (i32, i32, i32, i32) {
    %c0_i32 = arith.constant 0 : i32
    %c0_i32_0 = arith.constant 0 : i32
    %c0_i32_1 = arith.constant 0 : i32
    return %arg0, %c0_i32, %arg1, %c0_i32_0 : i32, i32, i32, i32
  }
  func.func @transform_1(%arg0: i32, %arg1: i32) -> (i32, i32, i32, i32) {
    %c0_i32 = arith.constant 0 : i32
    %c0_i32_0 = arith.constant 0 : i32
    %c0_i32_1 = arith.constant 0 : i32
    return %arg0, %arg1, %c0_i32, %c0_i32_0 : i32, i32, i32, i32
  }
  func.func @transform_2(%arg0: i32, %arg1: i32) -> (i32, i32, i32, i32) {
    %c0_i32 = arith.constant 0 : i32
    %c0_i32_0 = arith.constant 0 : i32
    %c0_i32_1 = arith.constant 0 : i32
    return %arg0, %arg1, %c0_i32, %c0_i32_0 : i32, i32, i32, i32
  }
}

</mosaic_0001>

<bundles_post_ra>
// kernel: tpu_custom_call.1
= control target key start
LH: loop header
LB: loop body
LE: loop exit
PB: predicated region body
PF: predicated region fallthrough
CT: control target
= control target key end

     0   :  { %8 = vsyncpa [#allocation3], 0  ;;  %s824_s0 = inlined_call_operand.hbm [shape: f32[2,4,2,128], index: 0, kind: input, shape index: {}]   ;;  %s825_s1 = inlined_call_operand.hbm [shape: f32[2,1,8,128], index: 1, kind: output, shape index: {0}]   ;;  %s826_s2 = inlined_call_operand.hbm [shape: f32[2,1,8,128], index: 2, kind: output, shape index: {1}]  }
   0x1   :  { %10 = vsyncpa [#allocation3 + $0x1], 0 }
   0x2   :  { %11 = vsyncpa [#allocation4], 0 }
   0x3   :  { %13 = vsyncpa [#allocation4 + $0x1], 0 }
   0x4   :  { %14 = vsyncpa [#allocation7], 0 }
   0x5   :  { %16 = vsyncpa [#allocation7 + $0x1], 0  ;;  %s645_s9 = smov 0   ;;  %s647_s10 = smov 0  }
   0x6   :  { %s649_s11 = smov 0   ;;  %s651_s12 = smov 0  }
   0x7   :  { %s653_s13 = smov 0   ;;  %s655_s14 = smov 0  }
   0x8 LB: > { %s391_s15 = sadd.s32 4294967295, %s623_s14   ;;  %s392_s16 = sadd.s32 4294967294, %s623_s14   ;;  %s623_s14 = sphi %s655_s14, %s22_s14   ;;  %s619_s13 = sphi %s653_s13, %s837_s13   ;;  %s615_s12 = sphi %s651_s12, %s836_s12   ;;  %s611_s11 = sphi %s649_s11, %s835_s11   ;;  %s607_s10 = sphi %s647_s10, %s834_s10   ;;  %s603_s9 = sphi %s645_s9, %s833_s9  }
   0x9   : > { %s34_s17 = sadd.s32 1, %s619_s13  ;;  %s43_s18 = sadd.s32 1, %s611_s11 }
   0xa   : > { %p36_p0 = scmp.ge.s32.totalorder %s34_s17, 2  ;;  %p50_p1 = scmp.ne.s32.totalorder %s611_s11, %s607_s10 }
   0xb   : > { %p51_p2 = scmp.eq.s32.totalorder %s623_s14, 0  ;;  %p56_p3 = scmp.ne.s32.totalorder %s607_s10, %s603_s9 }
   0xc   : > { %s839_s17 = smov (%p36_p0, %s34_s17), 0  ;;  %p57_p5 = scmp.eq.s32.totalorder %s391_s15, 0 }
   0xd   : > { %p686_p4 = por %p51_p2, %p50_p1  ;;  %s38_s20 = ssub.s32 %s619_s13, %s839_s17 }
   0xe   : > { %p82_p6 = scmp.eq.s32.totalorder %s391_s15, 1  ;;  %p41_p7 = scmp.eq.s32.totalorder %s38_s20, 0 }
   0xf   : > { %p692_p8 = por %p57_p5, %p56_p3  ;;  %p88_p10 = scmp.eq.s32.totalorder %s392_s16, 1 }
  0x10   : > { %p696_p9 = por %p82_p6, %p50_p1  ;;  %p433_p13 = scmp.lt.s32.totalorder %s623_s14, 2 }
  0x11   : > { %s701_s23 = scalar_select %p41_p7, %s611_s11, %s43_s18  }
  0x12   : > { %p703_p11 = por %p88_p10, %p56_p3  ;;  %s136_s25 = sand.u32 1, %s611_s11  }
  0x13   : > { %s395_s26 = sshll.u32 %s136_s25, 3  ;;  %s411_s27 = sshll.u32 %s619_s13, 7 }
  0x14   : > { %s147_s30 = scalar_lea.hbm %s824_s0, %s411_s27  ;;  %s140_s3 = scalar_lea.vmem [#allocation2], %s395_s26 }
  0x15   : > { %s148_s4 = sshll.u32 %s140_s3, 4  ;;  %p716_p0 = pnand %p433_p13, %p686_p4  ;;  %s149_s4 = int_to_ptr.vmem [resolvable:$true] %s148_s4 }
  0x16   : > { %p398_p1 = scmp.ge.s32.totalorder %s623_s14, 1  ;;  %s137_s6 = scalar_lea.sflag [#allocation3], %s136_s25 }
  0x17   : > { %p487_p2 = pneg %p716_p0  ;;  %s498_s7 = scalar_lea.vmem %s149_s4, 128 }
  0x18   : > { %p499_p3 = scmp.ne.s32.totalorder %s149_s4, %s498_s7  ;;  %s625_s8 = smov [#allocation2]  }
  0x19   : > { %s503_s15 = sshll.u32 %s625_s8, 4  ;;  %s504_s15 = int_to_ptr.vmem [resolvable:$false] %s503_s15 }
  0x1a   : > { %p501_p5 = pnand %p499_p3, %p487_p2  ;;  %s505_s16 = scalar_lea.vmem %s504_s15, 256 }
  0x1b   : > { %p506_p7 = scmp.lt.s32.totalorder %s149_s4, %s504_s15  ;;  %p507_p10 = scmp.lt.s32.totalorder %s505_s16, %s498_s7 }
  0x1c   : > { %p502_p6 = pneg %p501_p5 }
  0x1d   : > { %p508_p12 = por %p507_p10, %p506_p7 }
  0x1f   : > { %p509_p4 = pnand %p508_p12, %p502_p6 }
  0x21   : > { %512 = shalt.err (!%p509_p4)
}
  0x22   : > { %s626_s18 = smov 32   ;;  %s627_s19 = smov 2  }
  0x23   : > { %425 = dma.hbm_to_vmem [thread:$0]  (!%p716_p0), %s147_s30, 128, %s149_s4, %s137_s6, %s626_s18, %s626_s18, %s627_s19  }
  0x24   : > { %p156_p13 = scmp.lt.s32.totalorder %s623_s14, 3 }
  0x26   : > { %p157_p2 = pnand %p398_p1, %p156_p13 }
  0x27   : > { %s729_s20 = sand.u32 (!%p157_p2), 1, %s607_s10  }
  0x28   : > { %160 = sbr.rel (%p157_p2) target bundleno = 296 (0x128), region = 24  ;;  %s732_s25 = sshll.u32 (!%p157_p2), %s729_s20, 3 }
  0x29   : > { %s163_s26 = scalar_lea.sflag (!%p157_p2), [#allocation3], %s729_s20  ;;  %s166_s27 = scalar_lea.vmem (!%p157_p2), [#allocation2], %s732_s25 }
  0x2d   : > { %590 = dma.done.wait (%p692_p8), %s163_s26, 128  }
  0x2e   : > { %592 = vsyncadd (%p692_p8), %s163_s26, 4294967168  ;;  %v206_v0 = vlaneseq  ;;  %v192_v4 = vld [vmem:[%s166_s27] sm:$0x3]  ;;  %v402_v5 = vld [vmem:[%s166_s27 + $0x2] sm:$0x3]  ;;  %vm218_vm1 = vcmask 1041408  }
  0x2f   : > { %v403_v6 = vld [vmem:[%s166_s27 + $0x4] sm:$0x3]  ;;  %v199_v7 = vmul.f32 0.2989, %v192_v4  ;;  %v200_v8 = vmul.f32 0.587, %v402_v5 }
  0x30   : > { %v207_v1 = vshrl.u32 %v206_v0, 7  ;;  %v209_v2 = vand.u32 127, %v206_v0  ;;  %v202_v9 = vmul.f32 0.114, %v403_v6  ;;  %v404_v11 = vld [vmem:[%s166_s27 + $0x6] sm:$0x3] }
  0x31   : > { %v201_v10 = vadd.f32 %v200_v8, %v199_v7  ;;  %s407_s21 = sshll.u32 %s615_s12, 7  ;;  %s184_s28 = scalar_lea.vmem [#allocation5], %s732_s25 }
  0x32   : > { %v213_v3 = vmul.u32 128, %v207_v1  ;;  %s263_s29 = sshll.u32 %s184_s28, 4  ;;  %s191_s30 = scalar_lea.vmem [#allocation6], %s732_s25  ;;  %s752_s29 = int_to_ptr.vmem [resolvable:$true] %s263_s29 }
  0x33   : > { %v203_v13 = vadd.f32 %v202_v9, %v201_v10  ;;  %s277_s3 = sshll.u32 %s191_s30, 4  ;;  %s750_s6 = scalar_lea.hbm %s825_s1, %s407_s21  ;;  %s754_s3 = int_to_ptr.vmem [resolvable:$true] %s277_s3 }
  0x34   : > { %v214_v12 = vadd.s32 %v213_v3, %v209_v2  ;;  %s244_s8 = scalar_lea.sflag [#allocation4], %s729_s20  ;;  %s513_s15 = scalar_lea.vmem %s752_s29, 128 }
  0x35   : > { %v204_v14 = vsub.f32 %v203_v13, %v404_v11  ;;  %p514_p8 = scmp.ne.s32.totalorder %s752_s29, %s513_s15  ;;  %s628_s16 = smov [#allocation5]  }
  0x36   : > { %vm215_vm0 = vcmp.lt.s32.totalorder %v214_v12, 256  ;;  %s517_s18 = sshll.u32 %s628_s16, 4  ;;  %s518_s18 = int_to_ptr.vmem [resolvable:$false] %s517_s18 }
  0x37   : > { %v205_v15 = vmax.f32 %v204_v14, 0.0  ;;  %p515_p12 = pnand %p514_p8, %p696_p9  ;;  %s519_s19 = scalar_lea.vmem %s518_s18, 256 }
  0x38   : > { %p520_p1 = scmp.lt.s32.totalorder %s752_s29, %s518_s18  ;;  %p521_p3 = scmp.lt.s32.totalorder %s519_s19, %s513_s15 }
  0x39   : > { %v216_v16 = vsel %vm215_vm0, %v205_v15, inf  ;;  %v217_v17 = vsel %vm215_vm0, %v205_v15, -inf  ;;  %p516_p0 = pneg %p515_p12 }
  0x3a   : > { %v219_v18 = vsel %vm218_vm1, %v216_v16, inf  ;;  %v231_v19 = vsel %vm218_vm1, %v217_v17, -inf  ;;  %p522_p5 = por %p521_p3, %p520_p1 }
  0x3b   : > { %220 = vmin.xlane.f32.xlu0 %v219_v18 }
  0x3c   : > { %p523_p6 = pnand %p522_p5, %p516_p0 }
  0x3f   : > { %232 = vmax.xlane.f32.xlu0 %v231_v19 }
  0xc4   : > { %v221_v20 = vpop.xlane.xlu0 %220 }
  0xc5   : > { %v222_v21 = vrot.slane %v221_v20, 4 }
  0xc7   : > { %v223_v22 = vmin.f32 %v221_v20, %v222_v21 }
  0xc8   : > { %v233_v23 = vpop.xlane.xlu0 %232 }
  0xc9   : > { %v224_v24 = vrot.slane %v223_v22, 2  ;;  %v234_v25 = vrot.slane %v233_v23, 4 }
  0xcb   : > { %v235_v26 = vmax.f32 %v233_v23, %v234_v25  ;;  %v225_v27 = vmin.f32 %v223_v22, %v224_v24 }
  0xcd   : > { %v236_v28 = vrot.slane %v235_v26, 2  ;;  %v226_v29 = vrot.slane %v225_v27, 1 }
  0xcf   : > { %v237_v30 = vmax.f32 %v235_v26, %v236_v28  ;;  %v227_v31 = vmin.f32 %v225_v27, %v226_v29 }
  0xd1   : > { %412 = vpush %v227_v31  ;;  %v238_v32 = vrot.slane %v237_v30, 1 }
  0xd3   : > { %v239_v33 = vmax.f32 %v237_v30, %v238_v32 }
  0xd5   : > { %414 = vpush %v239_v33 }
 0x102   : > { %s413_s7 = spop %412 }
 0x103   : > { %v229_v34 = vstv %s413_s7 }
 0x104   : > { %230 = vst [vmem:[%s184_s28] sm:$0xff] %v229_v34 }
 0x105   : > { %526 = shalt.err (!%p523_p6)
}
 0x106   : > { %s527_s26 = scalar_lea.hbm %s750_s6, 128  ;;  %s531_s4 = scalar_lea.hbm %s825_s1, 256 }
 0x107   : > { %p528_p7 = scmp.ne.s32.totalorder %s750_s6, %s527_s26  ;;  %p532_p13 = scmp.lt.s32.totalorder %s750_s6, %s825_s1 }
 0x108   : > { %p533_p2 = scmp.lt.s32.totalorder %s531_s4, %s527_s26 }
 0x109   : > { %p529_p10 = pnand %p528_p7, %p696_p9 }
 0x10a   : > { %p534_p8 = por %p533_p2, %p532_p13 }
 0x10b   : > { %p530_p4 = pneg %p529_p10 }
 0x10d   : > { %p535_p12 = pnand %p534_p8, %p530_p4 }
 0x10f   : > { %538 = shalt.err (!%p535_p12)
}
 0x110   : > { %418 = dma.vmem_to_hbm [thread:$0]  (%p696_p9), %s752_s29, 128, %s750_s6, %s244_s8  }
 0x111   : > { %s415_s15 = spop %414  ;;  %s275_s19 = scalar_lea.hbm %s826_s2, %s407_s21 }
 0x112   : > { %v241_v35 = vstv %s415_s15  ;;  %s249_s26 = scalar_lea.sflag [#allocation7], %s729_s20  ;;  %s539_s27 = scalar_lea.vmem %s754_s3, 128 }
 0x113   : > { %242 = vst [vmem:[%s191_s30] sm:$0xff] %v241_v35  ;;  %p540_p0 = scmp.ne.s32.totalorder %s754_s3, %s539_s27  ;;  %s629_s28 = smov [#allocation6]  }
 0x114   : > { %s543_s4 = sshll.u32 %s629_s28, 4  ;;  %s544_s4 = int_to_ptr.vmem [resolvable:$false] %s543_s4 }
 0x115   : > { %p541_p1 = pnand %p540_p0, %p696_p9  ;;  %s545_s5 = scalar_lea.vmem %s544_s4, 256 }
 0x116   : > { %p546_p5 = scmp.lt.s32.totalorder %s754_s3, %s544_s4  ;;  %p547_p6 = scmp.lt.s32.totalorder %s545_s5, %s539_s27 }
 0x117   : > { %p542_p3 = pneg %p541_p1 }
 0x118   : > { %p548_p7 = por %p547_p6, %p546_p5 }
 0x11a   : > { %p549_p10 = pnand %p548_p7, %p542_p3 }
 0x11c   : > { %552 = shalt.err (!%p549_p10)
}
 0x11d   : > { %s553_s12 = scalar_lea.hbm %s275_s19, 128  ;;  %s557_s21 = scalar_lea.hbm %s826_s2, 256 }
 0x11e   : > { %p554_p4 = scmp.ne.s32.totalorder %s275_s19, %s553_s12  ;;  %p558_p8 = scmp.lt.s32.totalorder %s275_s19, %s826_s2 }
 0x11f   : > { %p559_p12 = scmp.lt.s32.totalorder %s557_s21, %s553_s12 }
 0x120   : > { %p555_p13 = pnand %p554_p4, %p696_p9 }
 0x121   : > { %p560_p0 = por %p559_p12, %p558_p8 }
 0x122   : > { %p556_p2 = pneg %p555_p13 }
 0x124   : > { %p561_p1 = pnand %p560_p0, %p556_p2 }
 0x126   : > { %564 = shalt.err (!%p561_p1)
}
 0x127   : > { %419 = dma.vmem_to_hbm [thread:$0]  (%p696_p9), %s754_s3, 128, %s275_s19, %s249_s26  }
 0x128 PF: > { %s289_s6 = sand.u32 1, %s603_s9   ;;  %p832_p3 = scmp.ge.s32.totalorder %s623_s14, 2 }
 0x129   : > { %s290_s8 = scalar_lea.sflag [#allocation4], %s289_s6 }
 0x12a   : > { %p427_p5 = pnand %p832_p3, %p703_p11 }
 0x12c   : > { %p428_p6 = pneg %p427_p5 }
 0x12e   : > { %594 = dma.done.wait (%p428_p6), %s290_s8, 128  }
 0x12f   : > { %596 = vsyncadd (%p428_p6), %s290_s8, 4294967168  ;;  %s299_s7 = scalar_lea.sflag [#allocation7], %s289_s6 }
 0x130   : > { %598 = dma.done.wait (%p428_p6), %s299_s7, 128  }
 0x131   : > { %600 = vsyncadd (%p428_p6), %s299_s7, 4294967168  ;;  %s22_s14 = sadd.s32 1, %s623_s14   ;;  %s833_s9 = smov %s607_s10 }
 0x132   : > { %p19_p7 = scmp.ge.s32.totalorder %s22_s14, 4   ;;  %s834_s10 = smov %s611_s11 }
 0x133   : > { %s835_s11 = smov %s701_s23  ;;  %s836_s12 = smov %s619_s13 }
 0x134   : > { %s837_s13 = smov %s839_s17  ;;  %21 = sbr.rel (!%p19_p7) target bundleno = 8 (0x8), region = 89 }
 0x139   :  { %304 = vsyncpa [#allocation3], 1 }
 0x13a   :  { %306 = vsyncpa [#allocation3 + $0x1], 1 }
 0x13b   :  { %307 = vsyncpa [#allocation4], 1 }
 0x13c   :  { %309 = vsyncpa [#allocation4 + $0x1], 1 }
 0x13d   :  { %310 = vsyncpa [#allocation7], 1 }
 0x13e   :  { %312 = vsyncpa [#allocation7 + $0x1], 1 }

</bundles_post_ra>
